<compile_context>
chip_gen: v7x
topology: tpu7x:2x2x1
jax: 0.10.0
libtpu: 0.0.40
codegen_flags: <defaults>
</compile_context>

<pallas_src>
import functools

import jax
import jax.numpy as jnp
from jax.experimental import pallas as pl
from jax.experimental.pallas import tpu as pltpu


_VMEM_LIMIT_BYTES = 32 * 1024 * 1024       # explicit scoped-VMEM limit (safe on v5e/v6e/v7x)
_WB_RESIDENT_MAX_BYTES = 2 * 1024 * 1024   # cap on lane-padded VMEM cost of resident params


def _round_up(a, b):
    return (a + b - 1) // b * b


def _round_down(a, b):
    return (a // b) * b


def _cdiv(a, b):
    return (a + b - 1) // b


def _sublane_multiple(dtype):
    itemsize = jnp.dtype(dtype).itemsize
    if itemsize >= 4:
        return 8
    if itemsize == 2:
        return 16
    return 32


# ----------------------------- kernels --------------------------------------


def _adain_kernel(x_ref, wb_ref, o_ref, *, eps, tr, inv_hw, wb_resident):
    """Single-pass AdaIN: each block holds `tr` full rows of length H*W."""
    x = x_ref[...].astype(jnp.float32)
    # One data pass: sum and sum-of-squares together (f32 accumulation).
    s = jnp.sum(x, axis=1, keepdims=True)
    ssq = jnp.sum(x * x, axis=1, keepdims=True)
    mean = s * inv_hw
    var = jnp.maximum(ssq * inv_hw - mean * mean, 0.0)   # biased variance
    inv_std = jax.lax.rsqrt(var + eps)                   # EUP slot

    if wb_resident:
        row0 = pl.multiple_of(pl.program_id(0) * tr, 8)
        wb = wb_ref[pl.ds(row0, tr), :]                  # grid-resident f32 params
    else:
        wb = wb_ref[...]
    # Fold normalize + affine into a single per-element FMA:
    #   out = x * scale + shift
    scale = inv_std * wb[:, 0:1]
    shift = wb[:, 1:2] - mean * scale
    o_ref[...] = (x * scale + shift).astype(o_ref.dtype)


def _stats_kernel(x_ref, stats_ref, sum_ref, ssq_ref, *, eps, inv_hw, hw, thw):
    """Pass 1 of the HW-tiled path: accumulate sum/sumsq over HW chunks."""
    j = pl.program_id(1)

    @pl.when(j == 0)
    def _():
        sum_ref[...] = jnp.zeros_like(sum_ref)
        ssq_ref[...] = jnp.zeros_like(ssq_ref)

    x = x_ref[...].astype(jnp.float32)
    if hw % thw != 0:
        # Mask lanes past the true spatial extent in the (partial) last block.
        col = j * thw + jax.lax.broadcasted_iota(jnp.int32, x.shape, 1)
        x = jnp.where(col < hw, x, 0.0)
    sum_ref[...] += jnp.sum(x, axis=1, keepdims=True)
    ssq_ref[...] += jnp.sum(x * x, axis=1, keepdims=True)

    @pl.when(j == pl.num_programs(1) - 1)
    def _():
        mean = sum_ref[...] * inv_hw
        var = jnp.maximum(ssq_ref[...] * inv_hw - mean * mean, 0.0)
        stats_ref[:, 0:1] = mean
        stats_ref[:, 1:2] = jax.lax.rsqrt(var + eps)


def _apply_kernel(x_ref, stats_ref, wb_ref, o_ref, *, tr, wb_resident):
    """Pass 2 of the HW-tiled path: normalize + affine per (row, HW) tile."""
    x = x_ref[...].astype(jnp.float32)
    if wb_resident:
        row0 = pl.multiple_of(pl.program_id(0) * tr, 8)
        st = stats_ref[pl.ds(row0, tr), :]
        wb = wb_ref[pl.ds(row0, tr), :]
    else:
        st = stats_ref[...]
        wb = wb_ref[...]
    mean = st[:, 0:1]
    inv_std = st[:, 1:2]
    scale = inv_std * wb[:, 0:1]
    shift = wb[:, 1:2] - mean * scale
    o_ref[...] = (x * scale + shift).astype(o_ref.dtype)


# ----------------------------- wrapper ---------------------------------------


def adaptive_instance_norm_2d(x, weight, bias, *, eps=1e-5,
                              target_block_bytes=2 * 1024 * 1024,
                              vmem_budget_bytes=16 * 1024 * 1024):
    """x: (N, C, H, W); weight/bias: (N*C,). Returns (N, C, H, W)."""
    n, c, h, w = x.shape
    bc = n * c
    hw = h * w
    itemsize = jnp.dtype(x.dtype).itemsize
    sub = _sublane_multiple(x.dtype)

    x2d = x.reshape(bc, hw)
    # Affine params stay float32 (no downcast to x.dtype) and are packed into
    # one (rows, 2) array -> a single resident VMEM buffer instead of two
    # tiny per-step DMAs.
    wb = jnp.stack([weight.astype(jnp.float32), bias.astype(jnp.float32)], axis=1)

    # Can a minimal (sub x hw) row tile fit the budget once x and out are
    # double-buffered (~4 block copies live at once)?
    bytes_per_row = hw * itemsize
    tr_cap = _round_down(vmem_budget_bytes // (4 * bytes_per_row), sub)

    if tr_cap >= sub:
        # ---------------- single-pass path: full rows per block --------------
        tr = max(sub, _round_down(target_block_bytes // bytes_per_row, sub))
        tr = min(tr, tr_cap, _round_up(bc, sub))
        # Keep >= 2 grid steps when there is enough work (v7x has 2 TCs).
        while tr > sub and _cdiv(bc, tr) < 2:
            tr = max(sub, _round_down(tr // 2, sub))
        bc_pad = _round_up(bc, tr)
        grid_rows = bc_pad // tr

        if bc_pad != bc:
            x2d = jnp.pad(x2d, ((0, bc_pad - bc), (0, 0)))
            wb = jnp.pad(wb, ((0, bc_pad - bc), (0, 0)))

        wb_resident = bc_pad * 512 <= _WB_RESIDENT_MAX_BYTES  # lane-padded f32 cost
        if wb_resident:
            wb_spec = pl.BlockSpec((bc_pad, 2), lambda i: (0, 0))
        else:
            wb_spec = pl.BlockSpec((tr, 2), lambda i: (i, 0))

        out2d = pl.pallas_call(
            functools.partial(_adain_kernel, eps=eps, tr=tr, inv_hw=1.0 / hw,
                              wb_resident=wb_resident),
            out_shape=jax.ShapeDtypeStruct((bc_pad, hw), x.dtype),
            grid_spec=pltpu.PrefetchScalarGridSpec(
                num_scalar_prefetch=0,
                grid=(grid_rows,),
                in_specs=[pl.BlockSpec((tr, hw), lambda i: (i, 0)), wb_spec],
                out_specs=pl.BlockSpec((tr, hw), lambda i: (i, 0)),
            ),
            compiler_params=pltpu.CompilerParams(
                dimension_semantics=("parallel",),
                vmem_limit_bytes=_VMEM_LIMIT_BYTES),
            cost_estimate=pl.CostEstimate(
                flops=6 * bc * hw, transcendentals=bc,
                bytes_accessed=2 * bc * hw * itemsize),
        )(x2d, wb)

    else:
        # ---------------- two-pass HW-tiled path (very large H*W) -----------
        tr = sub
        bc_pad = _round_up(bc, tr)
        grid_rows = bc_pad // tr
        if bc_pad != bc:
            x2d = jnp.pad(x2d, ((0, bc_pad - bc), (0, 0)))
            wb = jnp.pad(wb, ((0, bc_pad - bc), (0, 0)))

        thw_cap = max(128, _round_down(vmem_budget_bytes // (4 * tr * itemsize), 128))
        thw_target = max(128, _round_down(target_block_bytes // (tr * itemsize), 128))
        thw = min(thw_cap, thw_target, _round_up(hw, 128))
        n_hw = _cdiv(hw, thw)

        stats = pl.pallas_call(
            functools.partial(_stats_kernel, eps=eps, inv_hw=1.0 / hw, hw=hw, thw=thw),
            out_shape=jax.ShapeDtypeStruct((bc_pad, 2), jnp.float32),
            grid_spec=pltpu.PrefetchScalarGridSpec(
                num_scalar_prefetch=0,
                grid=(grid_rows, n_hw),
                in_specs=[pl.BlockSpec((tr, thw), lambda i, j: (i, j))],
                out_specs=pl.BlockSpec((tr, 2), lambda i, j: (i, 0)),
                scratch_shapes=[pltpu.VMEM((tr, 1), jnp.float32),
                                pltpu.VMEM((tr, 1), jnp.float32)],
            ),
            compiler_params=pltpu.CompilerParams(
                dimension_semantics=("parallel", "arbitrary"),
                vmem_limit_bytes=_VMEM_LIMIT_BYTES),
            cost_estimate=pl.CostEstimate(
                flops=3 * bc * hw, transcendentals=2 * bc,
                bytes_accessed=bc * hw * itemsize),
        )(x2d)

        wb_resident = bc_pad * 512 <= _WB_RESIDENT_MAX_BYTES
        if wb_resident:
            stats_spec = pl.BlockSpec((bc_pad, 2), lambda i, j: (0, 0))
            wb_spec = pl.BlockSpec((bc_pad, 2), lambda i, j: (0, 0))
        else:
            stats_spec = pl.BlockSpec((tr, 2), lambda i, j: (i, 0))
            wb_spec = pl.BlockSpec((tr, 2), lambda i, j: (i, 0))

        out2d = pl.pallas_call(
            functools.partial(_apply_kernel, tr=tr, wb_resident=wb_resident),
            out_shape=jax.ShapeDtypeStruct((bc_pad, hw), x.dtype),
            grid_spec=pltpu.PrefetchScalarGridSpec(
                num_scalar_prefetch=0,
                grid=(grid_rows, n_hw),
                in_specs=[pl.BlockSpec((tr, thw), lambda i, j: (i, j)),
                          stats_spec, wb_spec],
                out_specs=pl.BlockSpec((tr, thw), lambda i, j: (i, j)),
            ),
            compiler_params=pltpu.CompilerParams(
                dimension_semantics=("parallel", "parallel"),
                vmem_limit_bytes=_VMEM_LIMIT_BYTES),
            cost_estimate=pl.CostEstimate(
                flops=2 * bc * hw, transcendentals=0,
                bytes_accessed=2 * bc * hw * itemsize),
        )(x2d, stats, wb)

    if bc_pad != bc:
        out2d = out2d[:bc]
    return out2d.reshape(n, c, h, w)


# ----------------------------- reference & test -------------------------------


def _reference(x, weight, bias, eps=1e-5):
    n, c, h, w = x.shape
    xf = x.astype(jnp.float32).reshape(n * c, h * w)
    mean = xf.mean(axis=1, keepdims=True)
    var = ((xf - mean) ** 2).mean(axis=1, keepdims=True)
    out = (xf - mean) / jnp.sqrt(var + eps)
    out = out * weight.reshape(-1, 1).astype(jnp.float32) + bias.reshape(-1, 1).astype(jnp.float32)
    return out.reshape(n, c, h, w).astype(x.dtype)


if __name__ == "__main__":
    key = jax.random.PRNGKey(0)
    kx, kw, kb = jax.random.split(key, 3)

    N, C, H, W = 2, 4, 16, 16
    x = jax.random.normal(kx, (N, C, H, W), dtype=jnp.float32)
    # weight/bias are assigned externally in MUNIT-style code; init them
    # deterministically here with shape (N*C,).
    weight = jax.random.normal(kw, (N * C,), dtype=jnp.float32) * 0.5 + 1.0
    bias = jax.random.normal(kb, (N * C,), dtype=jnp.float32) * 0.1

    ref = _reference(x, weight, bias, eps=1e-5)

    # Main (single-pass, full-rows-per-block) path.
    out = adaptive_instance_norm_2d(x, weight, bias, eps=1e-5)
    jax.block_until_ready(out)
    assert out.shape == (N, C, H, W)
    assert jnp.allclose(out, ref, atol=1e-4, rtol=1e-4), "single-pass mismatch vs reference"

    # Exercise the HW-tiled two-pass path (used for very large spatial dims)
    # at this small shape by forcing a tiny VMEM budget.
    out2 = adaptive_instance_norm_2d(x, weight, bias, eps=1e-5,
                                     vmem_budget_bytes=16 * 1024,
                                     target_block_bytes=4 * 1024)
    jax.block_until_ready(out2)
    assert out2.shape == (N, C, H, W)
    assert jnp.allclose(out2, ref, atol=1e-4, rtol=1e-4), "two-pass mismatch vs reference"

    print("KERNEL_OK")
</pallas_src>

<mosaic_0001>
module attributes {stable_mosaic.version = 11 : i64} {
  func.func @_adain_kernel(%arg0: i32, %arg1: memref<8x256xf32, #tpu.memory_space<vmem>>, %arg2: memref<8x2xf32, #tpu.memory_space<vmem>>, %arg3: memref<8x256xf32, #tpu.memory_space<vmem>>) attributes {dimension_semantics = [#tpu.dimension_semantics<parallel>], iteration_bounds = array<i64: 1>, scalar_prefetch = 0 : i64, scratch_operands = 0 : i64, tpu.core_type = #tpu.core_type<tc>, window_params = [{transform_indices = @transform_0, window_bounds = array<i64: 8, 256>}, {pipeline_mode = #tpu.pipeline_mode<synchronous>, transform_indices = @transform_1, window_bounds = array<i64: 8, 2>}, {transform_indices = @transform_2, window_bounds = array<i64: 8, 256>}]} {
    %c0 = arith.constant 0 : index
    %c0_0 = arith.constant 0 : index
    %0 = vector.load %arg1[%c0, %c0_0] : memref<8x256xf32, #tpu.memory_space<vmem>>, vector<8x256xf32>
    %cst = arith.constant dense<0.000000e+00> : vector<8xf32>
    %1 = vector.multi_reduction <add>, %0, %cst [1] : vector<8x256xf32> to vector<8xf32>
    %2 = vector.shape_cast %1 : vector<8xf32> to vector<8x1xf32>
    %3 = arith.mulf %0, %0 : vector<8x256xf32>
    %cst_1 = arith.constant dense<0.000000e+00> : vector<8xf32>
    %4 = vector.multi_reduction <add>, %3, %cst_1 [1] : vector<8x256xf32> to vector<8xf32>
    %5 = vector.shape_cast %4 : vector<8xf32> to vector<8x1xf32>
    %cst_2 = arith.constant 3.906250e-03 : f32
    %6 = vector.broadcast %cst_2 : f32 to vector<8x1xf32>
    %7 = arith.mulf %2, %6 : vector<8x1xf32>
    %cst_3 = arith.constant 3.906250e-03 : f32
    %8 = vector.broadcast %cst_3 : f32 to vector<8x1xf32>
    %9 = arith.mulf %5, %8 : vector<8x1xf32>
    %10 = arith.mulf %7, %7 : vector<8x1xf32>
    %11 = arith.subf %9, %10 : vector<8x1xf32>
    %cst_4 = arith.constant 0.000000e+00 : f32
    %12 = vector.broadcast %cst_4 : f32 to vector<8x1xf32>
    %13 = arith.maximumf %11, %12 : vector<8x1xf32>
    %cst_5 = arith.constant 9.99999974E-6 : f32
    %14 = vector.broadcast %cst_5 : f32 to vector<8x1xf32>
    %15 = arith.addf %13, %14 : vector<8x1xf32>
    %16 = math.rsqrt %15 : vector<8x1xf32>
    %c8_i32 = arith.constant 8 : i32
    %17 = arith.muli %arg0, %c8_i32 : i32
    %18 = tpu.assume_multiple %17, 8 : i32
    %19 = arith.index_cast %18 : i32 to index
    %c0_6 = arith.constant 0 : index
    %20 = vector.load %arg2[%19, %c0_6] : memref<8x2xf32, #tpu.memory_space<vmem>>, vector<8x2xf32>
    %21 = vector.extract_strided_slice %20 {offsets = [0, 0], sizes = [8, 1], strides = [1, 1]} : vector<8x2xf32> to vector<8x1xf32>
    %22 = arith.mulf %16, %21 : vector<8x1xf32>
    %23 = vector.extract_strided_slice %20 {offsets = [0, 1], sizes = [8, 1], strides = [1, 1]} : vector<8x2xf32> to vector<8x1xf32>
    %24 = arith.mulf %7, %22 : vector<8x1xf32>
    %25 = arith.subf %23, %24 : vector<8x1xf32>
    %26 = vector.broadcast %22 : vector<8x1xf32> to vector<8x256xf32>
    %27 = arith.mulf %0, %26 : vector<8x256xf32>
    %28 = vector.broadcast %25 : vector<8x1xf32> to vector<8x256xf32>
    %29 = arith.addf %27, %28 : vector<8x256xf32>
    %c0_7 = arith.constant 0 : index
    %c0_8 = arith.constant 0 : index
    %30 = vector.load %arg3[%c0_7, %c0_8] : memref<8x256xf32, #tpu.memory_space<vmem>>, vector<8x256xf32>
    tpu.vector_store %arg3[%c0_7, %c0_8], %29 {strides = array<i32>} : memref<8x256xf32, #tpu.memory_space<vmem>>, vector<8x256xf32>,
    return
  }
  func.func @transform_0(%arg0: i32) -> (i32, i32) {
    %c0_i32 = arith.constant 0 : i32
    %c0_i32_0 = arith.constant 0 : i32
    return %arg0, %c0_i32 : i32, i32
  }
  func.func @transform_1(%arg0: i32) -> (i32, i32) {
    %c0_i32 = arith.constant 0 : i32
    %c0_i32_0 = arith.constant 0 : i32
    %c0_i32_1 = arith.constant 0 : i32
    return %c0_i32, %c0_i32_0 : i32, i32
  }
  func.func @transform_2(%arg0: i32) -> (i32, i32) {
    %c0_i32 = arith.constant 0 : i32
    %c0_i32_0 = arith.constant 0 : i32
    return %arg0, %c0_i32 : i32, i32
  }
}

</mosaic_0001>

<bundles_post_ra>
// kernel: tpu_custom_call.1
= control target key start
LH: loop header
LB: loop body
LE: loop exit
PB: predicated region body
PF: predicated region fallthrough
CT: control target
= control target key end

     0   :  { %7 = vsyncpa [#allocation3], 0  ;;  %s186_s0 = inlined_call_operand.hbm [shape: f32[8,256], index: 0, kind: input, shape index: {}]   ;;  %s187_s1 = inlined_call_operand.vmem [shape: f32[8,2], index: 1, kind: input, shape index: {}]   ;;  %s188_s2 = inlined_call_operand.hbm [shape: f32[8,256], index: 2, kind: output, shape index: {}]  }
   0x1   :  { %8 = vsyncpa [#allocation4], 0  ;;  %s139_s9 = smov [#allocation2]   ;;  %s91_s13 = scalar_lea.hbm %s186_s0, 256 }
   0x2   :  { %s15_s10 = sshll.u32 %s139_s9, 4  ;;  %p92_p0 = scmp.ne.s32.totalorder %s186_s0, %s91_s13  ;;  %s16_s10 = int_to_ptr.vmem [resolvable:$true] %s15_s10 }
   0x3   :  { %p95_p1 = scmp.lt.u32.totalorder %s91_s13, %s186_s0 }
   0x5   :  { %p97_p2 = pnand %p95_p1, %p92_p0 }
   0x7   :  { %100 = shalt.err (!%p97_p2)
}
   0x8   :  { %s101_s18 = scalar_lea.vmem %s16_s10, 256  ;;  %p106_p4 = scmp.lt.s32.totalorder %s16_s10, %s16_s10 }
   0x9   :  { %p102_p3 = scmp.ne.s32.totalorder %s16_s10, %s101_s18  ;;  %p107_p5 = scmp.lt.s32.totalorder %s101_s18, %s101_s18 }
   0xb   :  { %p108_p6 = por %p107_p5, %p106_p4 }
   0xd   :  { %p109_p7 = pnand %p108_p6, %p102_p3 }
   0xf   :  { %112 = shalt.err (!%p109_p7)
}
  0x10   :  { %18 = dma.hbm_to_vmem [thread:$0]  %s186_s0, 256, %s16_s10, [#allocation3]  }
  0x11   :  { %135 = dma.done.wait [#allocation3], 256  }
  0x12   :  { %136 = vsyncadd [#allocation3], 4294967040  ;;  %v24_v0 = vld [vmem:[#allocation2] sm:$0xff]  ;;  %v25_v1 = vld [vmem:[#allocation2 + $0x8] sm:$0xff]  ;;  %v140_v6 = vmov 0   ;;  %v141_v15 = vmov 1  }
  0x13   :  { %v26_v2 = vadd.f32 %v25_v1, %v24_v0  ;;  %v29_v3 = vmul.f32 %v24_v0, %v24_v0  ;;  %v30_v4 = vmul.f32 %v25_v1, %v25_v1  ;;  %87 = vset.pattern.permute.xlu1 %v140_v6  ;;  %88 = vset.pattern.permute.xlu0 %v141_v15  ;;  %v43_v16 = vld [vmem:[%s187_s1] sm:$0xff]  ;;  %s142_s22 = smov 1   ;;  %s143_s23 = smov [#allocation5]  }
  0x14   :  { %s73_s24 = sshll.u32 %s143_s23, 4  ;;  %s74_s24 = int_to_ptr.vmem [resolvable:$true] %s73_s24 }
  0x15   :  { %27 = vadd.xlane.f32.xlu0 %v26_v2  ;;  %v31_v5 = vadd.f32 %v30_v4, %v29_v3  ;;  %s113_s1 = scalar_lea.vmem %s74_s24, 256  ;;  %p118_p9 = scmp.lt.s32.totalorder %s74_s24, %s74_s24 }
  0x16   :  { %p114_p8 = scmp.ne.s32.totalorder %s74_s24, %s113_s1  ;;  %p119_p10 = scmp.lt.s32.totalorder %s113_s1, %s113_s1 }
  0x18   :  { %p120_p11 = por %p119_p10, %p118_p9 }
  0x19   :  { %32 = vadd.xlane.f32.xlu0 %v31_v5 }
  0x1a   :  { %p121_p12 = pnand %p120_p11, %p114_p8 }
  0xa2   :  { %v28_v7 = vpop.xlane.xlu0 %27 }
  0xa3   :  { %v34_v8 = vmul.f32 0.00390625, %v28_v7 }
  0xa5   :  { %v36_v10 = vmul.f32 %v34_v8, %v34_v8 }
  0xa6   :  { %v33_v9 = vpop.xlane.xlu0 %32 }
  0xa7   :  { %v35_v11 = vmul.f32 0.00390625, %v33_v9 }
  0xa9   :  { %v37_v12 = vsub.f32 %v35_v11, %v36_v10 }
  0xab   :  { %v38_v13 = vmax.f32 %v37_v12, 0.0 }
  0xad   :  { %v39_v14 = vadd.f32 1e-05, %v38_v13 }
  0xaf   :  { %89 = vrsqrt.f32 %v39_v14 }
  0xb9   :  { %v90_v17 = vpop.eup %89 }
  0xba   :  { %v44_v18 = vmul.f32 %v90_v17, %v43_v16 }
  0xbc   :  { %v45_v19 = vmul.f32 %v44_v18, %v34_v8 }
  0xbe   :  { %47 = vrot.lane.b32.xlu1 %v45_v19, %s142_s22 }
  0xc2   :  { %53 = vperm.xlu1 %87, %v44_v18  }
 0x130   :  { %v48_v20 = vpop.permute.xlu1 %47 }
 0x131   :  { %v50_v21 = vsub.f32 %v43_v16, %v48_v20 }
 0x133   :  { %60 = vperm.xlu0 %88, %v50_v21  }
 0x141   :  { %v54_v22 = vpop.permute.xlu1 %53 }
 0x142   :  { %v56_v23 = vmul.f32 %v54_v22, %v24_v0  ;;  %v57_v24 = vmul.f32 %v54_v22, %v25_v1 }
 0x1b2   :  { %v61_v25 = vpop.permute.xlu0 %60 }
 0x1b3   :  { %v63_v26 = vadd.f32 %v61_v25, %v56_v23  ;;  %v64_v27 = vadd.f32 %v61_v25, %v57_v24 }
 0x1b5   :  { %65 = vst [vmem:[#allocation5] sm:$0xff] %v63_v26  ;;  %66 = vst [vmem:[#allocation5 + $0x8] sm:$0xff] %v64_v27 }
 0x1b6   :  { %124 = shalt.err (!%p121_p12)
}
 0x1b7   :  { %s125_s27 = scalar_lea.hbm %s188_s2, 256 }
 0x1b8   :  { %p126_p13 = scmp.ne.s32.totalorder %s188_s2, %s125_s27  ;;  %p129_p0 = scmp.lt.u32.totalorder %s125_s27, %s188_s2 }
 0x1ba   :  { %p131_p1 = pnand %p129_p0, %p126_p13 }
 0x1bc   :  { %134 = shalt.err (!%p131_p1)
}
 0x1bd   :  { %76 = dma.vmem_to_hbm [thread:$0]  %s74_s24, 256, %s188_s2, [#allocation4]  }
 0x1be   :  { %137 = dma.done.wait [#allocation4], 256  }
 0x1bf   :  { %138 = vsyncadd [#allocation4], 4294967040 }
 0x1c0   :  { %80 = vsyncpa [#allocation3], 1 }
 0x1c1   :  { %81 = vsyncpa [#allocation4], 1 }

</bundles_post_ra>
